<compile_context>
chip_gen: v5e
topology: v5e:2x2
jax: 0.10.0
libtpu: 0.0.40
codegen_flags: <defaults>
</compile_context>

<pallas_src>
import functools

import jax
import jax.numpy as jnp
from jax.experimental import pallas as pl
from jax.experimental.pallas import tpu as pltpu

_LANE = 128  # pad classifier columns to a full lane width for a dense store


def _head_kernel(x_ref, w_ref, b_ref, logits_ref, feat_ref, acc_ref, *, hw):
    """One grid step: one batch element x one HW tile.

    x_ref      : (1, hw_tile, C)   feature-map tile
    w_ref      : (C, 128)          lane-padded classifier weight (W.T, zero-padded)
    b_ref      : (1, 128)          lane-padded classifier bias (f32)
    logits_ref : (1, 1, 128)       lane-padded logits for this batch element
    feat_ref   : (1, hw_tile, C)   relu'd feature map tile (returned to caller)
    acc_ref    : (1, C) f32        VMEM scratch: running spatial sum
    """
    hw_idx = pl.program_id(1)

    @pl.when(hw_idx == 0)
    def _init():
        acc_ref[...] = jnp.zeros_like(acc_ref)

    x = x_ref[...]
    r = jnp.maximum(x, 0)                       # relu (matches F.relu(x, inplace=True))
    feat_ref[...] = r.astype(feat_ref.dtype)    # relu'd map is returned (x.detach())
    # f32 accumulation of the spatial sum (sublane-axis reduction).
    acc_ref[...] += jnp.sum(r.astype(jnp.float32), axis=1)

    @pl.when(hw_idx == pl.num_programs(1) - 1)
    def _epilogue():
        pooled = acc_ref[...] * (1.0 / hw)      # adaptive avg pool -> (1, C), true H*W divisor
        logits = jnp.dot(
            pooled,
            w_ref[...].astype(jnp.float32),
            preferred_element_type=jnp.float32,
        ) + b_ref[...]                          # (1, 128)
        logits_ref[...] = logits[:, None, :].astype(logits_ref.dtype)


def densenet_head_forward(x_nhwc, weight, bias):
    """Fused relu + AdaptiveAvgPool2d((1,1)) + Linear head.

    Args:
      x_nhwc: (B, H, W, C) feature map from the DenseNet backbone (NHWC; the
              PyTorch reference is NCHW -- on TPU the backbone should emit NHWC).
      weight: (num_class, C) torch nn.Linear weight.
      bias  : (num_class,)   torch nn.Linear bias.
    Returns:
      (logits (B, num_class), relu'd feature map (B, H, W, C), None)
    """
    B, H, W, C = x_nhwc.shape
    num_class = weight.shape[0]
    HW = H * W

    # Lane-pad the classifier so the logits store is a dense 128-lane write.
    w_pad = jnp.zeros((C, _LANE), weight.dtype).at[:, :num_class].set(weight.T)
    b_pad = jnp.zeros((1, _LANE), jnp.float32).at[0, :num_class].set(
        bias.astype(jnp.float32))

    x3 = x_nhwc.reshape(B, HW, C)

    # HW tiling: whole slab per batch element when it fits comfortably in VMEM
    # (a full-extent block bypasses the (8,128) divisibility rule -- important
    # since HW=49 for densenet121@224). Only tile for very large spatial maps.
    MAX_HW_TILE = 2048
    if HW <= MAX_HW_TILE or HW % 8 != 0:
        hw_tile = HW
    else:
        hw_tile = MAX_HW_TILE
        while HW % hw_tile:
            hw_tile -= 8
        # TODO(synk): truly ragged large HW (not a multiple of 8) would need an
        # in-kernel row mask; standard DenseNet feature maps never hit this.
    n_hw = HW // hw_tile

    kernel = functools.partial(_head_kernel, hw=HW)

    logits_pad, feat = pl.pallas_call(
        kernel,
        out_shape=(
            jax.ShapeDtypeStruct((B, 1, _LANE), jnp.float32),
            jax.ShapeDtypeStruct((B, HW, C), x_nhwc.dtype),
        ),
        grid_spec=pltpu.PrefetchScalarGridSpec(
            num_scalar_prefetch=0,
            grid=(B, n_hw),
            in_specs=[
                pl.BlockSpec((1, hw_tile, C), lambda b, h: (b, h, 0)),  # feature tile
                pl.BlockSpec((C, _LANE), lambda b, h: (0, 0)),          # padded weight
                pl.BlockSpec((1, _LANE), lambda b, h: (0, 0)),          # padded bias
            ],
            out_specs=[
                pl.BlockSpec((1, 1, _LANE), lambda b, h: (b, 0, 0)),    # logits (resident over h)
                pl.BlockSpec((1, hw_tile, C), lambda b, h: (b, h, 0)),  # relu'd feature map
            ],
            scratch_shapes=[pltpu.VMEM((1, C), jnp.float32)],           # f32 pooled-sum accumulator
        ),
        compiler_params=pltpu.CompilerParams(
            # B is independent (megacore / v7x dual-TC sharding); HW is the
            # reduction axis and must stay last + "arbitrary".
            dimension_semantics=("parallel", "arbitrary"),
        ),
    )(x3, w_pad, b_pad)

    logits = logits_pad[:, 0, :num_class]           # drop lane padding
    feat_nhwc = feat.reshape(B, H, W, C)            # keep NHWC (no NCHW transpose)
    return logits, jax.lax.stop_gradient(feat_nhwc), None  # mirrors x.detach(), None


if __name__ == "__main__":
    key = jax.random.PRNGKey(0)
    k_x, k_w, k_b = jax.random.split(key, 3)

    # Small shapes consistent with the depth=121 head: indim (C) = 1024.
    B, H, W, C = 2, 4, 4, 1024
    num_class = 14

    x = jax.random.normal(k_x, (B, H, W, C), dtype=jnp.float32)
    weight = jax.random.normal(k_w, (num_class, C), dtype=jnp.float32) * 0.02
    bias = jax.random.normal(k_b, (num_class,), dtype=jnp.float32) * 0.02

    logits, feat, extra = densenet_head_forward(x, weight, bias)
    (logits, feat) = jax.block_until_ready((logits, feat))

    # Pure-JAX reference for a sanity check.
    r_ref = jnp.maximum(x, 0.0)
    pooled_ref = r_ref.reshape(B, H * W, C).mean(axis=1)
    logits_ref = pooled_ref @ weight.T + bias

    assert extra is None
    assert logits.shape == (B, num_class)
    assert feat.shape == (B, H, W, C)
    assert jnp.allclose(feat, r_ref), "relu'd feature map mismatch"
    assert jnp.allclose(logits, logits_ref, rtol=1e-4, atol=1e-4), "logits mismatch"

    print("KERNEL_OK")
</pallas_src>

<mosaic_0001>
module attributes {stable_mosaic.version = 11 : i64} {
  func.func @_head_kernel(%arg0: i32, %arg1: i32, %arg2: memref<1x16x1024xf32, #tpu.memory_space<vmem>>, %arg3: memref<1024x128xf32, #tpu.memory_space<vmem>>, %arg4: memref<1x128xf32, #tpu.memory_space<vmem>>, %arg5: memref<1x1x128xf32, #tpu.memory_space<vmem>>, %arg6: memref<1x16x1024xf32, #tpu.memory_space<vmem>>, %arg7: memref<1x1024xf32, #tpu.memory_space<vmem>>) attributes {dimension_semantics = [#tpu.dimension_semantics<parallel>, #tpu.dimension_semantics<arbitrary>], iteration_bounds = array<i64: 2, 1>, scalar_prefetch = 0 : i64, scratch_operands = 1 : i64, tpu.core_type = #tpu.core_type<tc>, window_params = [{transform_indices = @transform_0, window_bounds = array<i64: 1, 16, 1024>}, {pipeline_mode = #tpu.pipeline_mode<synchronous>, transform_indices = @transform_1, window_bounds = array<i64: 1024, 128>}, {pipeline_mode = #tpu.pipeline_mode<synchronous>, transform_indices = @transform_2, window_bounds = array<i64: 1, 128>}, {transform_indices = @transform_3, window_bounds = array<i64: 1, 1, 128>}, {transform_indices = @transform_4, window_bounds = array<i64: 1, 16, 1024>}]} {
    %c0_i32 = arith.constant 0 : i32
    %0 = arith.cmpi eq, %arg1, %c0_i32 : i32
    %1 = arith.extui %0 : i1 to i32
    %c0_i32_0 = arith.constant 0 : i32
    %2 = arith.cmpi ne, %1, %c0_i32_0 : i32
    scf.if %2 {
      %cst_13 = arith.constant 0.000000e+00 : f32
      %14 = vector.broadcast %cst_13 : f32 to vector<1x1024xf32>
      %c0_14 = arith.constant 0 : index
      %c0_15 = arith.constant 0 : index
      %15 = vector.load %arg7[%c0_14, %c0_15] : memref<1x1024xf32, #tpu.memory_space<vmem>>, vector<1x1024xf32>
      tpu.vector_store %arg7[%c0_14, %c0_15], %14 {strides = array<i32>} : memref<1x1024xf32, #tpu.memory_space<vmem>>, vector<1x1024xf32>,
    } else {
    }
    %c0 = arith.constant 0 : index
    %c0_1 = arith.constant 0 : index
    %c0_2 = arith.constant 0 : index
    %3 = vector.load %arg2[%c0, %c0_1, %c0_2] : memref<1x16x1024xf32, #tpu.memory_space<vmem>>, vector<1x16x1024xf32>
    %cst = arith.constant 0.000000e+00 : f32
    %4 = vector.broadcast %cst : f32 to vector<1x16x1024xf32>
    %5 = arith.maximumf %3, %4 : vector<1x16x1024xf32>
    %c0_3 = arith.constant 0 : index
    %c0_4 = arith.constant 0 : index
    %c0_5 = arith.constant 0 : index
    %6 = vector.load %arg6[%c0_3, %c0_4, %c0_5] : memref<1x16x1024xf32, #tpu.memory_space<vmem>>, vector<1x16x1024xf32>
    tpu.vector_store %arg6[%c0_3, %c0_4, %c0_5], %5 {strides = array<i32>} : memref<1x16x1024xf32, #tpu.memory_space<vmem>>, vector<1x16x1024xf32>,
    %c0_6 = arith.constant 0 : index
    %c0_7 = arith.constant 0 : index
    %7 = vector.load %arg7[%c0_6, %c0_7] : memref<1x1024xf32, #tpu.memory_space<vmem>>, vector<1x1024xf32>
    %cst_8 = arith.constant dense<0.000000e+00> : vector<1x1024xf32>
    %8 = vector.multi_reduction <add>, %5, %cst_8 [1] : vector<1x16x1024xf32> to vector<1x1024xf32>
    %9 = arith.addf %7, %8 : vector<1x1024xf32>
    %c0_9 = arith.constant 0 : index
    %c0_10 = arith.constant 0 : index
    %10 = vector.load %arg7[%c0_9, %c0_10] : memref<1x1024xf32, #tpu.memory_space<vmem>>, vector<1x1024xf32>
    tpu.vector_store %arg7[%c0_9, %c0_10], %9 {strides = array<i32>} : memref<1x1024xf32, #tpu.memory_space<vmem>>, vector<1x1024xf32>,
    %c0_i32_11 = arith.constant 0 : i32
    %11 = arith.cmpi eq, %arg1, %c0_i32_11 : i32
    %12 = arith.extui %11 : i1 to i32
    %c0_i32_12 = arith.constant 0 : i32
    %13 = arith.cmpi ne, %12, %c0_i32_12 : i32
    scf.if %13 {
      %c0_13 = arith.constant 0 : index
      %c0_14 = arith.constant 0 : index
      %14 = vector.load %arg7[%c0_13, %c0_14] : memref<1x1024xf32, #tpu.memory_space<vmem>>, vector<1x1024xf32>
      %cst_15 = arith.constant 6.250000e-02 : f32
      %15 = vector.broadcast %cst_15 : f32 to vector<1x1024xf32>
      %16 = arith.mulf %14, %15 : vector<1x1024xf32>
      %c0_16 = arith.constant 0 : index
      %c0_17 = arith.constant 0 : index
      %17 = vector.load %arg3[%c0_16, %c0_17] : memref<1024x128xf32, #tpu.memory_space<vmem>>, vector<1024x128xf32>
      %cst_18 = arith.constant dense<0.000000e+00> : vector<1x128xf32>
      %18 = tpu.matmul %16, %17, %cst_18 {dimension_numbers = #tpu.dot_dimension_numbers<[1], [0], [0], [1], [0, 0, 1, 1], [], []>} : vector<1x1024xf32>, vector<1024x128xf32>, vector<1x128xf32> -> vector<1x128xf32>
      %c0_19 = arith.constant 0 : index
      %c0_20 = arith.constant 0 : index
      %19 = vector.load %arg4[%c0_19, %c0_20] : memref<1x128xf32, #tpu.memory_space<vmem>>, vector<1x128xf32>
      %20 = arith.addf %18, %19 : vector<1x128xf32>
      %21 = vector.shape_cast %20 : vector<1x128xf32> to vector<1x1x128xf32>
      %c0_21 = arith.constant 0 : index
      %c0_22 = arith.constant 0 : index
      %c0_23 = arith.constant 0 : index
      %22 = vector.load %arg5[%c0_21, %c0_22, %c0_23] : memref<1x1x128xf32, #tpu.memory_space<vmem>>, vector<1x1x128xf32>
      tpu.vector_store %arg5[%c0_21, %c0_22, %c0_23], %21 {strides = array<i32>} : memref<1x1x128xf32, #tpu.memory_space<vmem>>, vector<1x1x128xf32>,
    } else {
    }
    return
  }
  func.func @transform_0(%arg0: i32, %arg1: i32) -> (i32, i32, i32) {
    %c0_i32 = arith.constant 0 : i32
    %c0_i32_0 = arith.constant 0 : i32
    return %arg0, %arg1, %c0_i32 : i32, i32, i32
  }
  func.func @transform_1(%arg0: i32, %arg1: i32) -> (i32, i32) {
    %c0_i32 = arith.constant 0 : i32
    %c0_i32_0 = arith.constant 0 : i32
    %c0_i32_1 = arith.constant 0 : i32
    return %c0_i32, %c0_i32_0 : i32, i32
  }
  func.func @transform_2(%arg0: i32, %arg1: i32) -> (i32, i32) {
    %c0_i32 = arith.constant 0 : i32
    %c0_i32_0 = arith.constant 0 : i32
    %c0_i32_1 = arith.constant 0 : i32
    return %c0_i32, %c0_i32_0 : i32, i32
  }
  func.func @transform_3(%arg0: i32, %arg1: i32) -> (i32, i32, i32) {
    %c0_i32 = arith.constant 0 : i32
    %c0_i32_0 = arith.constant 0 : i32
    %c0_i32_1 = arith.constant 0 : i32
    return %arg0, %c0_i32, %c0_i32_0 : i32, i32, i32
  }
  func.func @transform_4(%arg0: i32, %arg1: i32) -> (i32, i32, i32) {
    %c0_i32 = arith.constant 0 : i32
    %c0_i32_0 = arith.constant 0 : i32
    return %arg0, %arg1, %c0_i32 : i32, i32, i32
  }
}

</mosaic_0001>

<bundles_post_ra>
// kernel: tpu_custom_call.1
= control target key start
LH: loop header
LB: loop body
LE: loop exit
PB: predicated region body
PF: predicated region fallthrough
CT: control target
= control target key end

     0   :  { %s1483_s0 = inlined_call_operand.hbm [shape: f32[2,16,1024], index: 0, kind: input, shape index: {}]   ;;  %s1484_s1 = inlined_call_operand.hbm [shape: f32[1024,128], index: 1, kind: input, shape index: {}]   ;;  %s1485_s2 = inlined_call_operand.vmem [shape: f32[1,128], index: 2, kind: input, shape index: {}]   ;;  %s1486_s3 = inlined_call_operand.hbm [shape: f32[2,1,128], index: 3, kind: output, shape index: {0}]   ;;  %s1487_s4 = inlined_call_operand.hbm [shape: f32[2,16,1024], index: 4, kind: output, shape index: {1}]  }
   0x1   :  { %1489 = sst [smem:[#allocation16_spill]] %s1484_s1 }
   0x2   :  { %10 = vsyncpa [#allocation4], 0 }
   0x3   :  { %12 = vsyncpa [#allocation4 + $0x1], 0 }
   0x4   :  { %13 = vsyncpa [#allocation7], 0 }
   0x5   :  { %14 = vsyncpa [#allocation5], 0 }
   0x6   :  { %16 = vsyncpa [#allocation5 + $0x1], 0 }
   0x7   :  { %17 = vsyncpa [#allocation10], 0 }
   0x8   :  { %19 = vsyncpa [#allocation10 + $0x1], 0  ;;  %s1196_s15 = smov 0   ;;  %s1198_s16 = smov 0  }
   0x9   :  { %s1200_s17 = smov 0   ;;  %s1202_s18 = smov 0  }
   0xa   :  { %s1204_s19 = smov 0   ;;  %s1206_s20 = smov 0  }
   0xb LB: > { %s881_s21 = sadd.s32 4294967295, %s1162_s20   ;;  %s882_s22 = sadd.s32 4294967294, %s1162_s20   ;;  %s1162_s20 = sphi %s1206_s20, %s25_s20   ;;  %s1158_s19 = sphi %s1204_s19, %s1504_s19   ;;  %s1154_s18 = sphi %s1202_s18, %s1503_s18   ;;  %s1150_s17 = sphi %s1200_s17, %s1502_s17   ;;  %s1146_s16 = sphi %s1198_s16, %s1501_s16   ;;  %s1142_s15 = sphi %s1196_s15, %s1500_s15  }
   0xc   : > { %p59_p0 = scmp.ne.s32.totalorder %s1146_s16, %s1142_s15  ;;  %p1230_p1 = scmp.eq.s32.totalorder %s881_s21, 0 }
   0xd   : > { %p1234_p2 = scmp.eq.s32.totalorder %s881_s21, 1  ;;  %p131_p3 = scmp.eq.s32.totalorder %s882_s22, 1 }
   0xe   : > { %p1240_p4 = por %p1230_p1, %p59_p0  ;;  %p883_p5 = scmp.ge.s32.totalorder %s1162_s20, 1 }
   0xf   : > { %p1245_p6 = por %p131_p3, %p59_p0  ;;  %p166_p7 = scmp.lt.s32.totalorder %s1162_s20, 3 }
  0x10   : > { %s1494_s1 = sld [smem:[#allocation16_spill]]  ;;  %s1164_s5 = smov [#allocation6]  }
  0x11   : > { %p1253_p8 = pnand %p883_p5, %p166_p7  ;;  %s179_s6 = sshll.u32 %s1164_s5, 4  ;;  %s180_s6 = int_to_ptr.vmem [resolvable:$true] %s179_s6 }
  0x12   : > { %p885_p11 = scmp.ge.s32.totalorder %s1162_s20, 2  ;;  %s1165_s7 = smov 128  }
  0x13   : > { %p910_p9 = pneg %p1253_p8  ;;  %s1166_s8 = smov 8  }
  0x14   : > { %s37_s9 = sadd.s32 1, %s1158_s19  ;;  %s46_s10 = sadd.s32 1, %s1150_s17 }
  0x15   : > { %p911_p10 = pnand %p910_p9, %p1230_p1  ;;  %p39_p12 = scmp.ge.s32.totalorder %s37_s9, 2 }
  0x16   : > { %s177_s29 = sshll.u32 %s1494_s1, 4  ;;  %p53_p13 = scmp.ne.s32.totalorder %s1150_s17, %s1146_s16  ;;  %s178_s29 = int_to_ptr.hbm [resolvable:$true] %s177_s29 }
  0x17   : > { %913 = dma.hbm_to_vmem [thread:$0]  (!%p911_p10), %s178_s29, 16384, %s180_s6, [#allocation7], %s1165_s7, %s1165_s7, %s1166_s8  }
  0x18   : > { %p54_p0 = scmp.eq.s32.totalorder %s1162_s20, 0  ;;  %s1506_s9 = smov (%p39_p12, %s37_s9), 0 }
  0x19   : > { %1496 = sst [smem:[#allocation15_spill]] %s1506_s9  ;;  %p1275_p5 = por %p1234_p2, %p53_p13 }
  0x1a   : > { %p1269_p3 = por %p54_p0, %p53_p13  ;;  %s41_s13 = ssub.s32 %s1158_s19, %s1506_s9 }
  0x1b   : > { %p926_p7 = scmp.lt.s32.totalorder %s1162_s20, 2  ;;  %p44_p9 = scmp.eq.s32.totalorder %s41_s13, 0 }
  0x1c   : > { %s196_s14 = sand.u32 1, %s1150_s17   ;;  %s898_s27 = sshll.u32 %s1158_s19, 7 }
  0x1d   : > { %s886_s21 = sshll.u32 %s196_s14, 7  ;;  %s208_s5 = scalar_lea.hbm %s1483_s0, %s898_s27 }
  0x1e   : > { %s1284_s22 = scalar_select %p44_p9, %s1150_s17, %s46_s10  }
  0x1f   : > { %s200_s6 = scalar_lea.vmem [#allocation3], %s886_s21  ;;  %s209_s24 = sshll.u32 %s208_s5, 4  ;;  %s210_s24 = int_to_ptr.hbm [resolvable:$true] %s209_s24 }
  0x20   : > { %s211_s7 = sshll.u32 %s200_s6, 4  ;;  %p915_p2 = pnand %p926_p7, %p1269_p3  ;;  %s212_s7 = int_to_ptr.vmem [resolvable:$true] %s211_s7 }
  0x21   : > { %s197_s8 = scalar_lea.sflag [#allocation4], %s196_s14  ;;  %s1167_s1 = smov 1024  }
  0x22   : > { %s1168_s9 = smov 64   ;;  %223 = sbr.rel (%p1253_p8) target bundleno = 254 (0xfe), region = 32 }
  0x23   : > { %917 = dma.hbm_to_vmem [thread:$0]  (!%p915_p2), %s210_s24, 2048, %s212_s7, %s197_s8, %s1167_s1, %s1167_s1, %s1168_s9  }
  0x24   : > { %s1295_s10 = sand.u32 (!%p1253_p8), 1, %s1146_s16  }
  0x25   : > { %s890_s13 = sshll.u32 (!%p1253_p8), %s1295_s10, 7  ;;  %s226_s21 = scalar_lea.sflag (!%p1253_p8), [#allocation4], %s1295_s10 }
  0x26   : > { %s1301_s27 = scalar_lea.vmem (!%p1253_p8), [#allocation3], %s890_s13 }
  0x27   : > { %1125 = dma.done.wait (%p1240_p4), %s226_s21, 2048  }
  0x28   : > { %1127 = vsyncadd (%p1240_p4), %s226_s21, 4294965248 }
  0x29   : > { %1129 = dma.done.wait (%p1230_p1), [#allocation7], 16384  }
  0x2a   : > { %1131 = vsyncadd (%p1230_p1), [#allocation7], 4294950912  ;;  %v460_v0 = vld [vmem:[#allocation6 + $0x178] sm:$0xff]  ;;  %v459_v2 = vld [vmem:[#allocation6 + $0x170] sm:$0xff]  ;;  %s1346_s1 = scalar_lea.vmem [#allocation9], %s890_s13  ;;  %vm391_vm0 = vcmask 1040384  }
  0x2b   : > { %v428_v1 = vld [vmem:[#allocation6 + $0x78] sm:$0xff]  ;;  %599 = vmatpush.msra.mxu2 %v460_v0  ;;  %v427_v4 = vld [vmem:[#allocation6 + $0x70] sm:$0xff]  ;;  %v458_v6 = vld [vmem:[#allocation6 + $0x168] sm:$0xff]  ;;  %vm393_vm1 = vcmask 1042434   ;;  %vm395_vm2 = vcmask 1041408   ;;  %vm397_vm3 = vcmask 1044484  }
  0x2c   : > { %559 = vmatpush.msra.mxu0 %v428_v1  ;;  %v476_v3 = vld [vmem:[#allocation6 + $0x1f8] sm:$0xff]  ;;  %v475_v7 = vld [vmem:[#allocation6 + $0x1f0] sm:$0xff]  ;;  %v426_v8 = vld [vmem:[#allocation6 + $0x68] sm:$0xff]  ;;  %vm399_vm4 = vcmask 1046534   ;;  %vm401_vm5 = vcmask 1045508   ;;  %vm403_vm6 = vcmask 1043456  }
  0x2d   : > { %v444_v5 = vld [vmem:[#allocation6 + $0xf8] sm:$0xff]  ;;  %619 = vmatpush.msra.mxu3 %v476_v3  ;;  %600 = vmatpush.msra.mxu2 %v459_v2  ;;  %v443_v9 = vld [vmem:[#allocation6 + $0xf0] sm:$0xff]  ;;  %v474_v10 = vld [vmem:[#allocation6 + $0x1e8] sm:$0xff]  ;;  %s899_s23 = sshll.u32 %s1154_s18, 7  ;;  %s753_s11 = sshll.u32 %s1346_s1, 4  ;;  %s754_s11 = int_to_ptr.vmem [resolvable:$true] %s753_s11 }
  0x2e   : > { %579 = vmatpush.msra.mxu1 %v444_v5  ;;  %560 = vmatpush.msra.mxu0 %v427_v4  ;;  %v457_v11 = vld [vmem:[#allocation6 + $0x160] sm:$0xff]  ;;  %v442_v13 = vld [vmem:[#allocation6 + $0xe8] sm:$0xff]  ;;  %v456_v16 = vld [vmem:[#allocation6 + $0x158] sm:$0xff]  ;;  %s752_s9 = scalar_lea.hbm %s1487_s4, %s899_s23  ;;  %s725_s28 = scalar_lea.sflag [#allocation10], %s1295_s10 }
  0x2f   : > { %620 = vmatpush.msra.mxu3 %v475_v7  ;;  %v425_v12 = vld [vmem:[#allocation6 + $0x60] sm:$0xff]  ;;  %601 = vmatpush.msra.mxu2 %v458_v6  ;;  %v424_v17 = vld [vmem:[#allocation6 + $0x58] sm:$0xff]  ;;  %v455_v20 = vld [vmem:[#allocation6 + $0x150] sm:$0xff]  ;;  %s755_s14 = sshll.u32 %s752_s9, 4  ;;  %s1064_s24 = scalar_lea.hbm %s1487_s4, 256  ;;  %s756_s14 = int_to_ptr.hbm [resolvable:$true] %s755_s14 }
  0x30   : > { %580 = vmatpush.msra.mxu1 %v443_v9  ;;  %561 = vmatpush.msra.mxu0 %v426_v8  ;;  %v473_v14 = vld [vmem:[#allocation6 + $0x1e0] sm:$0xff]  ;;  %v472_v18 = vld [vmem:[#allocation6 + $0x1d8] sm:$0xff]  ;;  %v423_v21 = vld [vmem:[#allocation6 + $0x50] sm:$0xff]  ;;  %s1058_s29 = sshra.s32 %s756_s14, 4  ;;  %s1059_s29 = int_to_ptr.hbm [resolvable:$true] %s1058_s29 }
  0x31   : > { %v441_v15 = vld [vmem:[#allocation6 + $0xe0] sm:$0xff]  ;;  %621 = vmatpush.msra.mxu3 %v474_v10  ;;  %602 = vmatpush.msra.mxu2 %v457_v11  ;;  %v440_v19 = vld [vmem:[#allocation6 + $0xd8] sm:$0xff]  ;;  %v471_v22 = vld [vmem:[#allocation6 + $0x1d0] sm:$0xff]  ;;  %s1060_s5 = scalar_lea.hbm %s1059_s29, 128  ;;  %p1065_p10 = scmp.lt.s32.totalorder %s1059_s29, %s1487_s4 }
  0x32   : > { %581 = vmatpush.msra.mxu1 %v442_v13  ;;  %562 = vmatpush.msra.mxu0 %v425_v12  ;;  %v439_v23 = vld [vmem:[#allocation6 + $0xd0] sm:$0xff]  ;;  %v454_v24 = vld [vmem:[#allocation6 + $0x148] sm:$0xff]  ;;  %v453_v28 = vld [vmem:[#allocation6 + $0x140] sm:$0xff]  ;;  %p1061_p1 = scmp.ne.s32.totalorder %s1059_s29, %s1060_s5  ;;  %p1066_p12 = scmp.lt.s32.totalorder %s1064_s24, %s1060_s5 }
  0x33   : > { %622 = vmatpush.msra.mxu3 %v473_v14  ;;  %603 = vmatpush.msra.mxu2 %v456_v16  ;;  %v422_v25 = vld [vmem:[#allocation6 + $0x48] sm:$0xff]  ;;  %v421_v29 = vld [vmem:[#allocation6 + $0x40] sm:$0xff]  ;;  %v452_v32 = vld [vmem:[#allocation6 + $0x138] sm:$0xff] }
  0x34   : > { %582 = vmatpush.msra.mxu1 %v441_v15  ;;  %563 = vmatpush.msra.mxu0 %v424_v17  ;;  %v470_v26 = vld [vmem:[#allocation6 + $0x1c8] sm:$0xff]  ;;  %v469_v30 = vld [vmem:[#allocation6 + $0x1c0] sm:$0xff]  ;;  %v420_v33 = vld [vmem:[#allocation6 + $0x38] sm:$0xff]  ;;  %p1062_p4 = pnand %p1061_p1, %p1275_p5  ;;  %p1067_p13 = por %p1066_p12, %p1065_p10 }
  0x35   : > { %623 = vmatpush.msra.mxu3 %v472_v18  ;;  %604 = vmatpush.msra.mxu2 %v455_v20  ;;  %v438_v27 = vld [vmem:[#allocation6 + $0xc8] sm:$0xff]  ;;  %v437_v31 = vld [vmem:[#allocation6 + $0xc0] sm:$0xff]  ;;  %v468_v34 = vld [vmem:[#allocation6 + $0x1b8] sm:$0xff] }
  0x36   : > { %583 = vmatpush.msra.mxu1 %v440_v19  ;;  %564 = vmatpush.msra.mxu0 %v423_v21  ;;  %v436_v35 = vld [vmem:[#allocation6 + $0xb8] sm:$0xff]  ;;  %v451_v36 = vld [vmem:[#allocation6 + $0x130] sm:$0xff]  ;;  %v450_v40 = vld [vmem:[#allocation6 + $0x128] sm:$0xff]  ;;  %p1063_p8 = pneg %p1062_p4 }
  0x37   : > { %624 = vmatpush.msra.mxu3 %v471_v22  ;;  %605 = vmatpush.msra.mxu2 %v454_v24  ;;  %v419_v37 = vld [vmem:[#allocation6 + $0x30] sm:$0xff]  ;;  %v418_v41 = vld [vmem:[#allocation6 + $0x28] sm:$0xff]  ;;  %v449_v44 = vld [vmem:[#allocation6 + $0x120] sm:$0xff] }
  0x38   : > { %584 = vmatpush.msra.mxu1 %v439_v23  ;;  %565 = vmatpush.msra.mxu0 %v422_v25  ;;  %v467_v38 = vld [vmem:[#allocation6 + $0x1b0] sm:$0xff]  ;;  %v466_v42 = vld [vmem:[#allocation6 + $0x1a8] sm:$0xff]  ;;  %v417_v45 = vld [vmem:[#allocation6 + $0x20] sm:$0xff]  ;;  %p1068_p0 = pnand %p1067_p13, %p1063_p8 }
  0x39   : > { %625 = vmatpush.msra.mxu3 %v470_v26  ;;  %606 = vmatpush.msra.mxu2 %v453_v28  ;;  %v435_v39 = vld [vmem:[#allocation6 + $0xb0] sm:$0xff]  ;;  %v434_v43 = vld [vmem:[#allocation6 + $0xa8] sm:$0xff]  ;;  %v465_v46 = vld [vmem:[#allocation6 + $0x1a0] sm:$0xff] }
  0x3a   : > { %585 = vmatpush.msra.mxu1 %v438_v27  ;;  %566 = vmatpush.msra.mxu0 %v421_v29  ;;  %v433_v47 = vld [vmem:[#allocation6 + $0xa0] sm:$0xff]  ;;  %v448_v48 = vld [vmem:[#allocation6 + $0x118] sm:$0xff]  ;;  %v447_v52 = vld [vmem:[#allocation6 + $0x110] sm:$0xff] }
  0x3b   : > { %626 = vmatpush.msra.mxu3 %v469_v30  ;;  %607 = vmatpush.msra.mxu2 %v452_v32  ;;  %v416_v49 = vld [vmem:[#allocation6 + $0x18] sm:$0xff]  ;;  %v415_v53 = vld [vmem:[#allocation6 + $0x10] sm:$0xff]  ;;  %v446_v56 = vld [vmem:[#allocation6 + $0x108] sm:$0xff] }
  0x3c   : > { %586 = vmatpush.msra.mxu1 %v437_v31  ;;  %567 = vmatpush.msra.mxu0 %v420_v33  ;;  %v464_v50 = vld [vmem:[#allocation6 + $0x198] sm:$0xff]  ;;  %v463_v54 = vld [vmem:[#allocation6 + $0x190] sm:$0xff]  ;;  %v414_v57 = vld [vmem:[#allocation6 + $0x8] sm:$0xff] }
  0x3d   : > { %627 = vmatpush.msra.mxu3 %v468_v34  ;;  %608 = vmatpush.msra.mxu2 %v451_v36  ;;  %v432_v51 = vld [vmem:[#allocation6 + $0x98] sm:$0xff]  ;;  %v431_v55 = vld [vmem:[#allocation6 + $0x90] sm:$0xff]  ;;  %v462_v58 = vld [vmem:[#allocation6 + $0x188] sm:$0xff] }
  0x3e   : > { %587 = vmatpush.msra.mxu1 %v436_v35  ;;  %568 = vmatpush.msra.mxu0 %v419_v37  ;;  %v430_v59 = vld [vmem:[#allocation6 + $0x88] sm:$0xff]  ;;  %v445_v60 = vld [vmem:[#allocation6 + $0x100] sm:$0xff]  ;;  %v524_v62 = vld [vmem:[#allocation6 + $0x378] sm:$0xff] }
  0x3f   : > { %628 = vmatpush.msra.mxu3 %v467_v38  ;;  %609 = vmatpush.msra.mxu2 %v450_v40  ;;  %v413_v61 = vld [vmem:[#allocation6] sm:$0xff]  ;;  %v492_v0 = vld [vmem:[#allocation6 + $0x278] sm:$0xff]  ;;  %v523_v2 = vld [vmem:[#allocation6 + $0x370] sm:$0xff] }
  0x40   : > { %588 = vmatpush.msra.mxu1 %v435_v39  ;;  %569 = vmatpush.msra.mxu0 %v418_v41  ;;  %v461_v63 = vld [vmem:[#allocation6 + $0x180] sm:$0xff]  ;;  %v540_v1 = vld [vmem:[#allocation6 + $0x3f8] sm:$0xff]  ;;  %v491_v4 = vld [vmem:[#allocation6 + $0x270] sm:$0xff] }
  0x41   : > { %629 = vmatpush.msra.mxu3 %v466_v42  ;;  %610 = vmatpush.msra.mxu2 %v449_v44  ;;  %v429_v3 = vld [vmem:[#allocation6 + $0x80] sm:$0xff]  ;;  %v508_v5 = vld [vmem:[#allocation6 + $0x2f8] sm:$0xff]  ;;  %v522_v6 = vld [vmem:[#allocation6 + $0x368] sm:$0xff] }
  0x42   : > { %589 = vmatpush.msra.mxu1 %v434_v43  ;;  %570 = vmatpush.msra.mxu0 %v417_v45  ;;  %v539_v7 = vld [vmem:[#allocation6 + $0x3f0] sm:$0xff]  ;;  %v490_v8 = vld [vmem:[#allocation6 + $0x268] sm:$0xff]  ;;  %v521_v10 = vld [vmem:[#allocation6 + $0x360] sm:$0xff] }
  0x43   : > { %630 = vmatpush.msra.mxu3 %v465_v46  ;;  %611 = vmatpush.msra.mxu2 %v448_v48  ;;  %v507_v9 = vld [vmem:[#allocation6 + $0x2f0] sm:$0xff]  ;;  %v538_v11 = vld [vmem:[#allocation6 + $0x3e8] sm:$0xff]  ;;  %v489_v12 = vld [vmem:[#allocation6 + $0x260] sm:$0xff] }
  0x44   : > { %590 = vmatpush.msra.mxu1 %v433_v47  ;;  %571 = vmatpush.msra.mxu0 %v416_v49  ;;  %v506_v13 = vld [vmem:[#allocation6 + $0x2e8] sm:$0xff]  ;;  %v520_v14 = vld [vmem:[#allocation6 + $0x358] sm:$0xff]  ;;  %v537_v15 = vld [vmem:[#allocation6 + $0x3e0] sm:$0xff] }
  0x45   : > { %631 = vmatpush.msra.mxu3 %v464_v50  ;;  %612 = vmatpush.msra.mxu2 %v447_v52  ;;  %v488_v16 = vld [vmem:[#allocation6 + $0x258] sm:$0xff]  ;;  %v505_v17 = vld [vmem:[#allocation6 + $0x2e0] sm:$0xff]  ;;  %v272_v19 = vld [vmem:[%s1301_s27 + $0x8] sm:$0xff] }
  0x46   : > { %591 = vmatpush.msra.mxu1 %v432_v51  ;;  %572 = vmatpush.msra.mxu0 %v415_v53  ;;  %v271_v18 = vld [vmem:[%s1301_s27] sm:$0xff]  ;;  %v273_v20 = vld [vmem:[%s1301_s27 + $0x10] sm:$0xff]  ;;  %v536_v22 = vld [vmem:[#allocation6 + $0x3d8] sm:$0xff]  ;;  %v288_v27 = vmax.f32 %v272_v19, 0.0 }
  0x47   : > { %632 = vmatpush.msra.mxu3 %v463_v54  ;;  %613 = vmatpush.msra.mxu2 %v446_v56  ;;  %v519_v21 = vld [vmem:[#allocation6 + $0x350] sm:$0xff]  ;;  %v274_v23 = vld [vmem:[%s1301_s27 + $0x18] sm:$0xff]  ;;  %v1316_v24 = vld [vmem:[%s1301_s27 + $0x20] sm:$0xff]  ;;  %v287_v26 = vmax.f32 %v271_v18, 0.0  ;;  %v289_v28 = vmax.f32 %v273_v20, 0.0 }
  0x48   : > { %592 = vmatpush.msra.mxu1 %v431_v55  ;;  %573 = vmatpush.msra.mxu0 %v414_v57  ;;  %v1319_v25 = vld [vmem:[%s1301_s27 + $0x28] sm:$0xff]  ;;  %v487_v29 = vld [vmem:[#allocation6 + $0x250] sm:$0xff]  ;;  %v504_v30 = vld [vmem:[#allocation6 + $0x2d8] sm:$0xff]  ;;  %v290_v34 = vmax.f32 %v274_v23, 0.0  ;;  %v291_v35 = vmax.f32 %v1316_v24, 0.0  ;;  %304 = vst [vmem:[%s1346_s1 + $0x8] sm:$0xff] %v288_v27 }
  0x49   : > { %633 = vmatpush.msra.mxu3 %v462_v58  ;;  %614 = vmatpush.msra.mxu2 %v445_v60  ;;  %v1322_v31 = vld [vmem:[%s1301_s27 + $0x30] sm:$0xff]  ;;  %v1325_v32 = vld [vmem:[%s1301_s27 + $0x38] sm:$0xff]  ;;  %v1328_v33 = vld [vmem:[%s1301_s27 + $0x40] sm:$0xff]  ;;  %v292_v36 = vmax.f32 %v1319_v25, 0.0  ;;  %303 = vst [vmem:[%s1346_s1] sm:$0xff] %v287_v26 }
  0x4a   : > { %593 = vmatpush.msra.mxu1 %v430_v59  ;;  %574 = vmatpush.msra.mxu0 %v413_v61  ;;  %v518_v37 = vld [vmem:[#allocation6 + $0x348] sm:$0xff]  ;;  %v1336_v39 = vld [vmem:[%s1301_s27 + $0x50] sm:$0xff]  ;;  %v1339_v40 = vld [vmem:[%s1301_s27 + $0x58] sm:$0xff]  ;;  %v293_v41 = vmax.f32 %v1322_v31, 0.0  ;;  %v294_v42 = vmax.f32 %v1325_v32, 0.0  ;;  %v295_v43 = vmax.f32 %v1328_v33, 0.0 }
  0x4b   : > { %679 = vmatpush.msrb.mxu2 %v524_v62  ;;  %634 = vmatpush.msra.mxu3 %v461_v63  ;;  %v1333_v38 = vld [vmem:[%s1301_s27 + $0x48] sm:$0xff]  ;;  %v1350_v44 = vld [vmem:[%s1301_s27 + $0x60] sm:$0xff]  ;;  %v1356_v46 = vld [vmem:[%s1301_s27 + $0x70] sm:$0xff]  ;;  %v297_v48 = vmax.f32 %v1336_v39, 0.0  ;;  %v298_v49 = vmax.f32 %v1339_v40, 0.0  ;;  %305 = vst [vmem:[%s1346_s1 + $0x10] sm:$0xff] %v289_v28 }
  0x4c   : > { %639 = vmatpush.msrb.mxu0 %v492_v0  ;;  %594 = vmatpush.msra.mxu1 %v429_v3  ;;  %v1353_v45 = vld [vmem:[%s1301_s27 + $0x68] sm:$0xff]  ;;  %v296_v47 = vmax.f32 %v1333_v38, 0.0  ;;  %v535_v50 = vld [vmem:[#allocation6 + $0x3d0] sm:$0xff]  ;;  %v1362_v51 = vld [vmem:[%s1301_s27 + $0x78] sm:$0xff]  ;;  %v299_v52 = vmax.f32 %v1350_v44, 0.0  ;;  %v301_v54 = vmax.f32 %v1356_v46, 0.0  ;;  %v320_v55 = vadd.f32 %v295_v43, %v287_v26 }
  0x4d   : > { %699 = vmatpush.msrb.mxu3 %v540_v1  ;;  %680 = vmatpush.msrb.mxu2 %v523_v2  ;;  %v300_v53 = vmax.f32 %v1353_v45, 0.0  ;;  %v486_v56 = vld [vmem:[#allocation6 + $0x248] sm:$0xff]  ;;  %v503_v57 = vld [vmem:[#allocation6 + $0x2d0] sm:$0xff]  ;;  %v302_v58 = vmax.f32 %v1362_v51, 0.0  ;;  %v334_v60 = vadd.f32 %v297_v48, %v289_v28  ;;  %v517_v61 = vld [vmem:[#allocation6 + $0x340] sm:$0xff]  ;;  %306 = vst [vmem:[%s1346_s1 + $0x18] sm:$0xff] %v290_v34  ;;  %v341_v0 = vadd.f32 %v298_v49, %v290_v34 }
  0x4e   : > { %640 = vmatpush.msrb.mxu0 %v491_v4  ;;  %659 = vmatpush.msrb.mxu1 %v508_v5  ;;  %v327_v59 = vadd.f32 %v296_v47, %v288_v27  ;;  %v534_v62 = vld [vmem:[#allocation6 + $0x3c8] sm:$0xff]  ;;  %v321_v63 = vrot.slane %v320_v55, 4  ;;  %v348_v1 = vadd.f32 %v299_v52, %v291_v35  ;;  %v485_v2 = vld [vmem:[#allocation6 + $0x240] sm:$0xff]  ;;  %307 = vst [vmem:[%s1346_s1 + $0x20] sm:$0xff] %v291_v35  ;;  %v515_v20 = vld [vmem:[#allocation6 + $0x330] sm:$0xff] }
  0x4f   : > { %681 = vmatpush.msrb.mxu2 %v522_v6  ;;  %700 = vmatpush.msrb.mxu3 %v539_v7  ;;  %v502_v3 = vld [vmem:[#allocation6 + $0x2c8] sm:$0xff]  ;;  %v335_v5 = vrot.slane %v334_v60, 4  ;;  %v355_v6 = vadd.f32 %v300_v53, %v292_v36  ;;  %v362_v7 = vadd.f32 %v301_v54, %v293_v41  ;;  %308 = vst [vmem:[%s1346_s1 + $0x28] sm:$0xff] %v292_v36  ;;  %v483_v26 = vld [vmem:[#allocation6 + $0x230] sm:$0xff]  ;;  %v500_v27 = vld [vmem:[#allocation6 + $0x2b8] sm:$0xff] }
  0x50   : > { %641 = vmatpush.msrb.mxu0 %v490_v8  ;;  %660 = vmatpush.msrb.mxu1 %v507_v9  ;;  %v328_v4 = vrot.slane %v327_v59, 4  ;;  %v516_v8 = vld [vmem:[#allocation6 + $0x338] sm:$0xff]  ;;  %v533_v9 = vld [vmem:[#allocation6 + $0x3c0] sm:$0xff]  ;;  %309 = vst [vmem:[%s1346_s1 + $0x30] sm:$0xff] %v293_v41  ;;  %v514_v32 = vld [vmem:[#allocation6 + $0x328] sm:$0xff] }
  0x51   : > { %682 = vmatpush.msrb.mxu2 %v521_v10  ;;  %701 = vmatpush.msrb.mxu3 %v538_v11  ;;  %v322_v10 = vadd.f32 %v321_v63, %v320_v55  ;;  %v342_v11 = vrot.slane %v341_v0, 4  ;;  %v356_v18 = vrot.slane %v355_v6, 4  ;;  %v363_v19 = vrot.slane %v362_v7, 4  ;;  %310 = vst [vmem:[%s1346_s1 + $0x38] sm:$0xff] %v294_v42  ;;  %v531_v34 = vld [vmem:[#allocation6 + $0x3b0] sm:$0xff]  ;;  %v482_v33 = vld [vmem:[#allocation6 + $0x228] sm:$0xff] }
  0x52   : > { %642 = vmatpush.msrb.mxu0 %v489_v12  ;;  %661 = vmatpush.msrb.mxu1 %v506_v13  ;;  %v349_v12 = vrot.slane %v348_v1, 4  ;;  %v369_v13 = vadd.f32 %v302_v58, %v294_v42  ;;  %311 = vst [vmem:[%s1346_s1 + $0x40] sm:$0xff] %v295_v43  ;;  %v499_v42 = vld [vmem:[#allocation6 + $0x2b0] sm:$0xff]  ;;  %v513_v38 = vld [vmem:[#allocation6 + $0x320] sm:$0xff] }
  0x53   : > { %683 = vmatpush.msrb.mxu2 %v520_v14  ;;  %702 = vmatpush.msrb.mxu3 %v537_v15  ;;  %v484_v14 = vld [vmem:[#allocation6 + $0x238] sm:$0xff]  ;;  %v501_v15 = vld [vmem:[#allocation6 + $0x2c0] sm:$0xff]  ;;  %v343_v23 = vadd.f32 %v342_v11, %v341_v0  ;;  %v364_v31 = vadd.f32 %v363_v19, %v362_v7  ;;  %312 = vst [vmem:[%s1346_s1 + $0x48] sm:$0xff] %v296_v47  ;;  %v530_v47 = vld [vmem:[#allocation6 + $0x3a8] sm:$0xff] }
  0x54   : > { %643 = vmatpush.msrb.mxu0 %v488_v16  ;;  %662 = vmatpush.msrb.mxu1 %v505_v17  ;;  %v329_v16 = vadd.f32 %v328_v4, %v327_v59  ;;  %v336_v17 = vadd.f32 %v335_v5, %v334_v60  ;;  %v350_v24 = vadd.f32 %v349_v12, %v348_v1  ;;  %v370_v25 = vrot.slane %v369_v13, 4  ;;  %v481_v0 = vld [vmem:[#allocation6 + $0x220] sm:$0xff]  ;;  %v498_v1 = vld [vmem:[#allocation6 + $0x2a8] sm:$0xff]  ;;  %v512_v4 = vld [vmem:[#allocation6 + $0x318] sm:$0xff] }
  0x55   : > { %684 = vmatpush.msrb.mxu2 %v519_v21  ;;  %703 = vmatpush.msrb.mxu3 %v536_v22  ;;  %v532_v21 = vld [vmem:[#allocation6 + $0x3b8] sm:$0xff]  ;;  %v323_v22 = vrot.slane %v322_v10, 2  ;;  %v344_v36 = vrot.slane %v343_v23, 2  ;;  %313 = vst [vmem:[%s1346_s1 + $0x50] sm:$0xff] %v297_v48  ;;  %v529_v44 = vld [vmem:[#allocation6 + $0x3a0] sm:$0xff]  ;;  %v511_v11 = vld [vmem:[#allocation6 + $0x310] sm:$0xff] }
  0x56   : > { %644 = vmatpush.msrb.mxu0 %v487_v29  ;;  %663 = vmatpush.msrb.mxu1 %v504_v30  ;;  %v330_v28 = vrot.slane %v329_v16, 2  ;;  %v337_v29 = vrot.slane %v336_v17, 2  ;;  %v357_v30 = vadd.f32 %v356_v18, %v355_v6  ;;  %v371_v41 = vadd.f32 %v370_v25, %v369_v13  ;;  %314 = vst [vmem:[%s1346_s1 + $0x58] sm:$0xff] %v298_v49  ;;  %v528_v12 = vld [vmem:[#allocation6 + $0x398] sm:$0xff]  ;;  %v527_v19 = vld [vmem:[#allocation6 + $0x390] sm:$0xff] }
  0x57   : > { %685 = vmatpush.msrb.mxu2 %v518_v37  ;;  %704 = vmatpush.msrb.mxu3 %v535_v50  ;;  %v324_v35 = vadd.f32 %v323_v22, %v322_v10  ;;  %v351_v37 = vrot.slane %v350_v24, 2  ;;  %v345_v59 = vadd.f32 %v344_v36, %v343_v23  ;;  %315 = vst [vmem:[%s1346_s1 + $0x60] sm:$0xff] %v299_v52  ;;  %v478_v23 = vld [vmem:[#allocation6 + $0x208] sm:$0xff] }
  0x58   : > { %645 = vmatpush.msrb.mxu0 %v486_v56  ;;  %664 = vmatpush.msrb.mxu1 %v503_v57  ;;  %v331_v43 = vadd.f32 %v330_v28, %v329_v16  ;;  %v338_v50 = vadd.f32 %v337_v29, %v336_v17  ;;  %v358_v55 = vrot.slane %v357_v30, 2  ;;  %v365_v56 = vrot.slane %v364_v31, 2  ;;  %316 = vst [vmem:[%s1346_s1 + $0x68] sm:$0xff] %v300_v53  ;;  %v496_v16 = vld [vmem:[#allocation6 + $0x298] sm:$0xff]  ;;  %v526_v28 = vld [vmem:[#allocation6 + $0x388] sm:$0xff] }
  0x59   : > { %686 = vmatpush.msrb.mxu2 %v517_v61  ;;  %705 = vmatpush.msrb.mxu3 %v534_v62  ;;  %v325_v57 = vrot.slane %v324_v35, 1  ;;  %v352_v60 = vadd.f32 %v351_v37, %v350_v24  ;;  %v372_v61 = vrot.slane %v371_v41, 2  ;;  %v346_v49 = vrot.slane %v345_v59, 1  ;;  %317 = vst [vmem:[%s1346_s1 + $0x70] sm:$0xff] %v301_v54  ;;  %v495_v24 = vld [vmem:[#allocation6 + $0x290] sm:$0xff]  ;;  %v493_v37 = vld [vmem:[#allocation6 + $0x280] sm:$0xff] }
  0x5a   : > { %646 = vmatpush.msrb.mxu0 %v485_v2  ;;  %665 = vmatpush.msrb.mxu1 %v502_v3  ;;  %v332_v39 = vrot.slane %v331_v43, 1  ;;  %v339_v48 = vrot.slane %v338_v50, 1  ;;  %v359_v62 = vadd.f32 %v358_v55, %v357_v30  ;;  %v366_v63 = vadd.f32 %v365_v56, %v364_v31  ;;  %318 = vst [vmem:[%s1346_s1 + $0x78] sm:$0xff] %v302_v58  ;;  %v510_v58 = vld [vmem:[#allocation6 + $0x308] sm:$0xff]  ;;  %v477_v31 = vld [vmem:[#allocation6 + $0x200] sm:$0xff] }
  0x5b   : > { %687 = vmatpush.msrb.mxu2 %v516_v8  ;;  %706 = vmatpush.msrb.mxu3 %v533_v9  ;;  %v326_v40 = vadd.f32 %v325_v57, %v324_v35  ;;  %v353_v2 = vrot.slane %v352_v60, 1  ;;  %v373_v3 = vadd.f32 %v372_v61, %v371_v41  ;;  %v480_v8 = vld [vmem:[#allocation6 + $0x218] sm:$0xff]  ;;  %v497_v9 = vld [vmem:[#allocation6 + $0x2a0] sm:$0xff]  ;;  %v347_v45 = vadd.f32 %v346_v49, %v345_v59 }
  0x5c   : > { %647 = vmatpush.msrb.mxu0 %v484_v14  ;;  %666 = vmatpush.msrb.mxu1 %v501_v15  ;;  %v333_v52 = vadd.f32 %v332_v39, %v331_v43  ;;  %v340_v5 = vadd.f32 %v339_v48, %v338_v50  ;;  %v360_v6 = vrot.slane %v359_v62, 1  ;;  %v367_v7 = vrot.slane %v366_v63, 1  ;;  %v479_v15 = vld [vmem:[#allocation6 + $0x210] sm:$0xff]  ;;  %v525_v35 = vld [vmem:[#allocation6 + $0x380] sm:$0xff] }
  0x5d   : > { %688 = vmatpush.msrb.mxu2 %v515_v20  ;;  %707 = vmatpush.msrb.mxu3 %v532_v21  ;;  %v354_v53 = vadd.f32 %v353_v2, %v352_v60  ;;  %v374_v10 = vrot.slane %v373_v3, 1  ;;  %v386_v18 = vrot.slane %v347_v45, 5 }
  0x5e   : > { %648 = vmatpush.msrb.mxu0 %v483_v26  ;;  %667 = vmatpush.msrb.mxu1 %v500_v27  ;;  %v361_v13 = vadd.f32 %v360_v6, %v359_v62  ;;  %v368_v46 = vadd.f32 %v367_v7, %v366_v63  ;;  %v384_v54 = vrot.slane %v333_v52, 7  ;;  %v385_v14 = vrot.slane %v340_v5, 6  ;;  %v509_v27 = vld [vmem:[#allocation6 + $0x300] sm:$0xff] }
  0x5f   : > { %689 = vmatpush.msrb.mxu2 %v514_v32  ;;  %708 = vmatpush.msrb.mxu3 %v531_v34  ;;  %v375_v17 = vadd.f32 %v374_v10, %v373_v3  ;;  %v387_v51 = vrot.slane %v354_v53, 4  ;;  %v494_v32 = vld [vmem:[#allocation6 + $0x288] sm:$0xff] }
  0x60   : > { %649 = vmatpush.msrb.mxu0 %v482_v33  ;;  %668 = vmatpush.msrb.mxu1 %v499_v42  ;;  %v388_v20 = vrot.slane %v361_v13, 3  ;;  %v389_v21 = vrot.slane %v368_v46, 2  ;;  %v392_v22 = vsel %vm391_vm0, %v326_v40, %v384_v54  ;;  %v394_v26 = vsel %vm393_vm1, %v385_v14, %v386_v18 }
  0x61   : > { %690 = vmatpush.msrb.mxu2 %v513_v38  ;;  %709 = vmatpush.msrb.mxu3 %v530_v47  ;;  %v390_v25 = vrot.slane %v375_v17, 1  ;;  %v396_v29 = vsel %vm395_vm2, %v392_v22, %v394_v26 }
  0x62   : > { %650 = vmatpush.msrb.mxu0 %v481_v0  ;;  %669 = vmatpush.msrb.mxu1 %v498_v1  ;;  %v398_v30 = vsel %vm397_vm3, %v387_v51, %v388_v20 }
  0x63   : > { %691 = vmatpush.msrb.mxu2 %v512_v4  ;;  %710 = vmatpush.msrb.mxu3 %v529_v44  ;;  %v400_v34 = vsel %vm399_vm4, %v389_v21, %v390_v25 }
  0x64   : > { %651 = vmatpush.msrb.mxu0 %v480_v8  ;;  %670 = vmatpush.msrb.mxu1 %v497_v9  ;;  %v402_v36 = vsel %vm401_vm5, %v398_v30, %v400_v34 }
  0x65   : > { %692 = vmatpush.msrb.mxu2 %v511_v11  ;;  %711 = vmatpush.msrb.mxu3 %v528_v12  ;;  %v404_v41 = vsel %vm403_vm6, %v396_v29, %v402_v36 }
  0x66   : > { %652 = vmatpush.msrb.mxu0 %v479_v15  ;;  %671 = vmatpush.msrb.mxu1 %v496_v16  ;;  %v412_v33 = vmul.f32 0.0625, %v404_v41 }
  0x67   : > { %693 = vmatpush.msrb.mxu2 %v510_v58  ;;  %712 = vmatpush.msrb.mxu3 %v527_v19 }
  0x68   : > { %653 = vmatpush.msrb.mxu0 %v478_v23  ;;  %672 = vmatpush.msrb.mxu1 %v495_v24  ;;  %v545_v42 = vperm.slane %v412_v33, 2  ;;  %v543_v43 = vperm.slane %v412_v33, 0  ;;  %v546_v50 = vperm.slane %v412_v33, 3  ;;  %v544_v55 = vperm.slane %v412_v33, 1 }
  0x69   : > { %694 = vmatpush.msrb.mxu2 %v509_v27  ;;  %713 = vmatpush.msrb.mxu3 %v526_v28  ;;  %v549_v56 = vperm.slane %v412_v33, 6  ;;  %v547_v38 = vperm.slane %v412_v33, 4  ;;  %v550_v47 = vperm.slane %v412_v33, 7  ;;  %v548_v57 = vperm.slane %v412_v33, 5 }
  0x6a   : > { %654 = vmatpush.msrb.mxu0 %v477_v31  ;;  %673 = vmatpush.msrb.mxu1 %v494_v32 }
  0x6b   : > { %714 = vmatpush.msrb.mxu3 %v525_v35  ;;  %615 = vmatmul.f32.vlgmr.msra.gmra.mxu2 %v545_v42 }
  0x6c   : > { %674 = vmatpush.msrb.mxu1 %v493_v37  ;;  %575 = vmatmul.f32.vlgmr.msra.gmra.mxu0 %v543_v43 }
  0x6d   : > { %635 = vmatmul.f32.vlgmr.msra.gmra.mxu3 %v546_v50  ;;  %595 = vmatmul.f32.vlgmr.msra.gmra.mxu1 %v544_v55 }
  0x73   : > { %695 = vmatmul.f32.vlgmr.msrb.gmra.mxu2 %v549_v56 }
  0x74   : > { %655 = vmatmul.f32.vlgmr.msrb.gmra.mxu0 %v547_v38 }
  0x75   : > { %715 = vmatmul.f32.vlgmr.msrb.gmra.mxu3 %v550_v47  ;;  %675 = vmatmul.f32.vlgmr.msrb.gmra.mxu1 %v548_v57 }
  0x76   : > { %1071 = shalt.err (!%p1068_p0)
}
  0x77   : > { %s1169_s21 = smov 1024   ;;  %s1170_s27 = smov 64   ;;  %v541_v59 = vld [vmem:[%s1485_s2] sm:$0x1] }
  0x78   : > { %907 = dma.vmem_to_hbm [thread:$0]  (%p1275_p5), %s754_s11, 2048, %s756_s14, %s725_s28, %s1169_s21, %s1169_s21, %s1170_s27  }
  0x79   : > { %s734_s9 = scalar_lea.hbm %s1486_s3, %s1154_s18  ;;  %s256_s11 = scalar_lea.vmem [#allocation8], %s1295_s10 }
  0x7a   : > { %s736_s14 = sshll.u32 %s256_s11, 4  ;;  %s738_s28 = sshll.u32 %s734_s9, 4  ;;  %s737_s14 = int_to_ptr.vmem [resolvable:$true] %s736_s14  ;;  %s739_s28 = int_to_ptr.hbm [resolvable:$true] %s738_s28 }
  0x7b   : > { %s721_s29 = scalar_lea.sflag [#allocation5], %s1295_s10  ;;  %s1086_s5 = sshra.s32 %s739_s28, 4  ;;  %s1087_s5 = int_to_ptr.hbm [resolvable:$true] %s1086_s5 }
  0x7c   : > { %s1088_s6 = scalar_lea.hbm %s1087_s5, 1  ;;  %s1092_s24 = scalar_lea.hbm %s1486_s3, 2 }
  0x7d   : > { %p1089_p3 = scmp.ne.s32.totalorder %s1087_s5, %s1088_s6  ;;  %p1093_p2 = scmp.lt.s32.totalorder %s1087_s5, %s1486_s3 }
  0x7e   : > { %p1094_p1 = scmp.lt.s32.totalorder %s1092_s24, %s1088_s6 }
  0x7f   : > { %p1090_p7 = pnand %p1089_p3, %p1275_p5 }
  0x80   : > { %p1095_p4 = por %p1094_p1, %p1093_p2 }
  0x81   : > { %p1091_p9 = pneg %p1090_p7 }
  0x83   : > { %p1096_p8 = pnand %p1095_p4, %p1091_p9 }
  0xe9   : > { %v576_v60 = vpop.f32.mrf.mxu0 }
  0xea   : > { %v577_v61 = vadd.f32 %v576_v60, %v541_v59  ;;  %v596_v39 = vpop.f32.mrf.mxu1 }
  0xec   : > { %v597_v48 = vadd.f32 %v596_v39, %v577_v61 }
  0xee   : > { %v616_v62 = vpop.f32.mrf.mxu2 }
  0xef   : > { %v617_v63 = vadd.f32 %v616_v62, %v597_v48 }
  0xf0   : > { %v636_v0 = vpop.f32.mrf.mxu3 }
  0xf1   : > { %v656_v1 = vpop.f32.mrf.mxu0  ;;  %v637_v40 = vadd.f32 %v636_v0, %v617_v63 }
  0xf2   : > { %v676_v49 = vpop.f32.mrf.mxu1 }
  0xf3   : > { %v657_v2 = vadd.f32 %v656_v1, %v637_v40 }
  0xf5   : > { %v677_v3 = vadd.f32 %v676_v49, %v657_v2 }
  0xf6   : > { %v696_v4 = vpop.f32.mrf.mxu2 }
  0xf7   : > { %v697_v44 = vadd.f32 %v696_v4, %v677_v3 }
  0xf8   : > { %v716_v52 = vpop.f32.mrf.mxu3 }
  0xf9   : > { %v717_v5 = vadd.f32 %v716_v52, %v697_v44 }
  0xfb   : > { %719 = vst [vmem:[%s256_s11] sm:$0x1] %v717_v5 }
  0xfc   : > { %1099 = shalt.err (!%p1096_p8)
}
  0xfd   : > { %906 = dma.vmem_to_hbm [thread:$0]  (%p1275_p5), %s737_s14, 16, %s739_s28, %s721_s29  }
  0xfe PF: > { %s770_s10 = sand.u32 1, %s1142_s15   ;;  %p919_p10 = pnand %p885_p11, %p1245_p6 }
  0xff   : > { %s771_s21 = scalar_lea.sflag [#allocation5], %s770_s10 }
 0x100   : > { %p920_p12 = pneg %p919_p10 }
 0x102   : > { %1133 = dma.done.wait (%p920_p12), %s771_s21, 16  }
 0x103   : > { %1135 = vsyncadd (%p920_p12), %s771_s21, 4294967280  ;;  %s780_s27 = scalar_lea.sflag [#allocation10], %s770_s10 }
 0x104   : > { %1137 = dma.done.wait (%p920_p12), %s780_s27, 2048  }
 0x105   : > { %1139 = vsyncadd (%p920_p12), %s780_s27, 4294965248  ;;  %s25_s20 = sadd.s32 1, %s1162_s20   ;;  %s1499_s12 = sld [smem:[#allocation15_spill]] }
 0x106   : > { %p22_p13 = scmp.ge.s32.totalorder %s25_s20, 4   ;;  %s1500_s15 = smov %s1146_s16 }
 0x107   : > { %s1501_s16 = smov %s1150_s17  ;;  %s1502_s17 = smov %s1284_s22 }
 0x108   : > { %s1503_s18 = smov %s1158_s19  ;;  %24 = sbr.rel (!%p22_p13) target bundleno = 11 (0xb), region = 106 }
 0x10b   : > { %s1504_s19 = smov %s1499_s12 }
 0x10d   :  { %786 = vsyncpa [#allocation4], 1 }
 0x10e   :  { %788 = vsyncpa [#allocation4 + $0x1], 1 }
 0x10f   :  { %789 = vsyncpa [#allocation7], 1 }
 0x110   :  { %790 = vsyncpa [#allocation5], 1 }
 0x111   :  { %792 = vsyncpa [#allocation5 + $0x1], 1 }
 0x112   :  { %793 = vsyncpa [#allocation10], 1 }
 0x113   :  { %795 = vsyncpa [#allocation10 + $0x1], 1 }

</bundles_post_ra>
